<compile_context>
chip_gen: v5e
topology: v5e:2x2
jax: 0.10.0
libtpu: 0.0.40
codegen_flags: <defaults>
</compile_context>

<pallas_src>
import jax
import jax.numpy as jnp
from jax.experimental import pallas as pl
from jax.experimental.pallas import tpu as pltpu

# ----------------------------- model / problem sizes -----------------------------
BATCH = 16          # example batch
IN_DIM = 32         # in_dim
HID1 = 64           # n_hidden_1
HID2 = 64           # n_hidden_2
OUT_DIM = 16        # out_dim

BN_EPS = 1e-5       # torch BatchNorm1d default eps
NEG_SLOPE = 1.0     # nn.LeakyReLU(True) -> negative_slope = 1.0 (identity)

LANE = 128
OUT_PAD = ((OUT_DIM + LANE - 1) // LANE) * LANE   # lane-dense padded output width
TB_MAX = 256        # batch rows per grid step for large batches

_PREC = jax.lax.Precision.HIGHEST


# ----------------------------- fused Pallas kernel -----------------------------
def _mlp_kernel(x_ref, w1_ref, b1_ref, w2_ref, b2_ref, w3_ref, b3_ref, o_ref):
    x = x_ref[...]                                                   # (TB, IN_DIM)

    # layer1: folded Linear+BN  (+ LeakyReLU only if slope != 1.0)
    h = jnp.dot(x, w1_ref[...], preferred_element_type=jnp.float32,
                precision=_PREC) + b1_ref[...]
    if NEG_SLOPE != 1.0:
        h = jnp.where(h >= 0, h, NEG_SLOPE * h)

    # layer2: folded Linear+BN  (+ LeakyReLU only if slope != 1.0)
    h = jnp.dot(h, w2_ref[...], preferred_element_type=jnp.float32,
                precision=_PREC) + b2_ref[...]
    if NEG_SLOPE != 1.0:
        h = jnp.where(h >= 0, h, NEG_SLOPE * h)

    # layer3: Linear (output lane-padded to 128; sliced back in the wrapper)
    o_ref[...] = jnp.dot(h, w3_ref[...], preferred_element_type=jnp.float32,
                         precision=_PREC) + b3_ref[...]


# ----------------------------- one-time parameter prep -----------------------------
def prepare_params(p):
    """Fold eval-mode BatchNorm into the Linear layers and lane-pad the output layer.

    Done once outside the forward hot path (weights are frozen at inference).
    """
    s1 = p["g1"] / jnp.sqrt(p["v1"] + BN_EPS)              # (1, HID1)
    w1f = p["w1"] * s1                                      # (IN_DIM, HID1)
    b1f = (p["b1"] - p["m1"]) * s1 + p["be1"]               # (1, HID1)

    s2 = p["g2"] / jnp.sqrt(p["v2"] + BN_EPS)               # (1, HID2)
    w2f = p["w2"] * s2                                      # (HID1, HID2)
    b2f = (p["b2"] - p["m2"]) * s2 + p["be2"]               # (1, HID2)

    w3p = jnp.zeros((HID2, OUT_PAD), jnp.float32).at[:, :OUT_DIM].set(p["w3"])
    b3p = jnp.zeros((1, OUT_PAD), jnp.float32).at[:, :OUT_DIM].set(p["b3"])

    return {"w1": w1f, "b1": b1f, "w2": w2f, "b2": b2f, "w3": w3p, "b3": b3p}


# ----------------------------- forward wrapper -----------------------------
def batch_net_large(x, fp):
    """Fused forward of Batch_Net_large.  x: (B, IN_DIM) f32; fp: prepare_params() output."""
    bsz = x.shape[0]

    if bsz <= TB_MAX:
        tb = bsz                       # single grid step: no per-step overhead
        pad = 0
    else:
        tb = TB_MAX                    # multiple of 8 -> valid sublane tiling
        pad = (-bsz) % tb
        if pad:
            x = jnp.concatenate(
                [x, jnp.zeros((pad, x.shape[1]), x.dtype)], axis=0)

    padded = bsz + pad
    grid_n = padded // tb

    def row_spec(n):
        return pl.BlockSpec((tb, n), lambda i: (i, 0))

    def full_spec(shape):
        return pl.BlockSpec(shape, lambda i: (0, 0))

    in_specs = [
        row_spec(IN_DIM),
        full_spec((IN_DIM, HID1)), full_spec((1, HID1)),
        full_spec((HID1, HID2)), full_spec((1, HID2)),
        full_spec((HID2, OUT_PAD)), full_spec((1, OUT_PAD)),
    ]

    # Only shard across TensorCores when there is more than one grid step.
    sem = ("parallel",) if grid_n > 1 else ("arbitrary",)

    out_padded = pl.pallas_call(
        _mlp_kernel,
        grid=(grid_n,),
        in_specs=in_specs,
        out_specs=row_spec(OUT_PAD),
        out_shape=jax.ShapeDtypeStruct((padded, OUT_PAD), jnp.float32),
        compiler_params=pltpu.CompilerParams(dimension_semantics=sem),
    )(x, fp["w1"], fp["b1"], fp["w2"], fp["b2"], fp["w3"], fp["b3"])

    return out_padded[:bsz, :OUT_DIM]


# ----------------------------- plain-JAX reference (unfolded) -----------------------------
def batch_net_large_ref(x, p):
    def act(h):
        return jnp.where(h >= 0, h, NEG_SLOPE * h)

    h = jnp.dot(x, p["w1"], precision=_PREC) + p["b1"]
    h = (h - p["m1"]) * (p["g1"] / jnp.sqrt(p["v1"] + BN_EPS)) + p["be1"]
    h = act(h)
    h = jnp.dot(h, p["w2"], precision=_PREC) + p["b2"]
    h = (h - p["m2"]) * (p["g2"] / jnp.sqrt(p["v2"] + BN_EPS)) + p["be2"]
    h = act(h)
    return jnp.dot(h, p["w3"], precision=_PREC) + p["b3"]


# ----------------------------- parameter init -----------------------------
def init_params(key):
    ks = jax.random.split(key, 12)

    def nrm(k, shape, scale=0.1):
        return scale * jax.random.normal(k, shape, dtype=jnp.float32)

    return {
        # nn.Linear stores weight as (out, in); we keep the transposed (in, out) layout.
        "w1": nrm(ks[0], (IN_DIM, HID1)), "b1": nrm(ks[1], (1, HID1)),
        "g1": 1.0 + nrm(ks[2], (1, HID1)), "be1": nrm(ks[3], (1, HID1)),
        "m1": nrm(ks[4], (1, HID1)),
        "v1": jax.random.uniform(ks[5], (1, HID1), jnp.float32, 0.5, 1.5),

        "w2": nrm(ks[6], (HID1, HID2)), "b2": nrm(ks[7], (1, HID2)),
        "g2": 1.0 + nrm(ks[8], (1, HID2)), "be2": nrm(ks[9], (1, HID2)),
        "m2": nrm(ks[10], (1, HID2)),
        "v2": jax.random.uniform(ks[11], (1, HID2), jnp.float32, 0.5, 1.5),

        "w3": nrm(jax.random.fold_in(key, 100), (HID2, OUT_DIM)),
        "b3": nrm(jax.random.fold_in(key, 101), (1, OUT_DIM)),
    }


# ----------------------------- main -----------------------------
if __name__ == "__main__":
    key = jax.random.PRNGKey(0)
    k_par, k_x = jax.random.split(key)

    params = init_params(k_par)
    folded = prepare_params(params)          # one-time host-side BN folding + padding
    x = jax.random.normal(k_x, (BATCH, IN_DIM), dtype=jnp.float32)

    out = batch_net_large(x, folded)
    jax.block_until_ready(out)

    assert out.shape == (BATCH, OUT_DIM)

    ref = batch_net_large_ref(x, params)
    max_err = float(jnp.max(jnp.abs(out - ref)))
    assert jnp.allclose(out, ref, rtol=1e-4, atol=1e-4), f"max_err={max_err}"

    print("KERNEL_OK")
</pallas_src>

<mosaic_0001>
module attributes {stable_mosaic.version = 11 : i64} {
  func.func @_mlp_kernel(%arg0: i32, %arg1: memref<16x32xf32, #tpu.memory_space<vmem>>, %arg2: memref<32x64xf32, #tpu.memory_space<vmem>>, %arg3: memref<1x64xf32, #tpu.memory_space<vmem>>, %arg4: memref<64x64xf32, #tpu.memory_space<vmem>>, %arg5: memref<1x64xf32, #tpu.memory_space<vmem>>, %arg6: memref<64x128xf32, #tpu.memory_space<vmem>>, %arg7: memref<1x128xf32, #tpu.memory_space<vmem>>, %arg8: memref<16x128xf32, #tpu.memory_space<vmem>>) attributes {dimension_semantics = [#tpu.dimension_semantics<arbitrary>], iteration_bounds = array<i64: 1>, scalar_prefetch = 0 : i64, scratch_operands = 0 : i64, tpu.core_type = #tpu.core_type<tc>, window_params = [{transform_indices = @transform_0, window_bounds = array<i64: 16, 32>}, {pipeline_mode = #tpu.pipeline_mode<synchronous>, transform_indices = @transform_1, window_bounds = array<i64: 32, 64>}, {pipeline_mode = #tpu.pipeline_mode<synchronous>, transform_indices = @transform_2, window_bounds = array<i64: 1, 64>}, {pipeline_mode = #tpu.pipeline_mode<synchronous>, transform_indices = @transform_3, window_bounds = array<i64: 64, 64>}, {pipeline_mode = #tpu.pipeline_mode<synchronous>, transform_indices = @transform_4, window_bounds = array<i64: 1, 64>}, {pipeline_mode = #tpu.pipeline_mode<synchronous>, transform_indices = @transform_5, window_bounds = array<i64: 64, 128>}, {pipeline_mode = #tpu.pipeline_mode<synchronous>, transform_indices = @transform_6, window_bounds = array<i64: 1, 128>}, {transform_indices = @transform_7, window_bounds = array<i64: 16, 128>}]} {
    %c0 = arith.constant 0 : index
    %c0_0 = arith.constant 0 : index
    %0 = vector.load %arg1[%c0, %c0_0] : memref<16x32xf32, #tpu.memory_space<vmem>>, vector<16x32xf32>
    %c0_1 = arith.constant 0 : index
    %c0_2 = arith.constant 0 : index
    %1 = vector.load %arg2[%c0_1, %c0_2] : memref<32x64xf32, #tpu.memory_space<vmem>>, vector<32x64xf32>
    %cst = arith.constant dense<0.000000e+00> : vector<16x64xf32>
    %2 = tpu.matmul %0, %1, %cst {dimension_numbers = #tpu.dot_dimension_numbers<[1], [0], [0], [1], [0, 0, 1, 1], [], []>, precision = #tpu.contract_precision<fp32>} : vector<16x32xf32>, vector<32x64xf32>, vector<16x64xf32> -> vector<16x64xf32>
    %c0_3 = arith.constant 0 : index
    %c0_4 = arith.constant 0 : index
    %3 = vector.load %arg3[%c0_3, %c0_4] : memref<1x64xf32, #tpu.memory_space<vmem>>, vector<1x64xf32>
    %4 = vector.broadcast %3 : vector<1x64xf32> to vector<16x64xf32>
    %5 = arith.addf %2, %4 : vector<16x64xf32>
    %c0_5 = arith.constant 0 : index
    %c0_6 = arith.constant 0 : index
    %6 = vector.load %arg4[%c0_5, %c0_6] : memref<64x64xf32, #tpu.memory_space<vmem>>, vector<64x64xf32>
    %cst_7 = arith.constant dense<0.000000e+00> : vector<16x64xf32>
    %7 = tpu.matmul %5, %6, %cst_7 {dimension_numbers = #tpu.dot_dimension_numbers<[1], [0], [0], [1], [0, 0, 1, 1], [], []>, precision = #tpu.contract_precision<fp32>} : vector<16x64xf32>, vector<64x64xf32>, vector<16x64xf32> -> vector<16x64xf32>
    %c0_8 = arith.constant 0 : index
    %c0_9 = arith.constant 0 : index
    %8 = vector.load %arg5[%c0_8, %c0_9] : memref<1x64xf32, #tpu.memory_space<vmem>>, vector<1x64xf32>
    %9 = vector.broadcast %8 : vector<1x64xf32> to vector<16x64xf32>
    %10 = arith.addf %7, %9 : vector<16x64xf32>
    %c0_10 = arith.constant 0 : index
    %c0_11 = arith.constant 0 : index
    %11 = vector.load %arg6[%c0_10, %c0_11] : memref<64x128xf32, #tpu.memory_space<vmem>>, vector<64x128xf32>
    %cst_12 = arith.constant dense<0.000000e+00> : vector<16x128xf32>
    %12 = tpu.matmul %10, %11, %cst_12 {dimension_numbers = #tpu.dot_dimension_numbers<[1], [0], [0], [1], [0, 0, 1, 1], [], []>, precision = #tpu.contract_precision<fp32>} : vector<16x64xf32>, vector<64x128xf32>, vector<16x128xf32> -> vector<16x128xf32>
    %c0_13 = arith.constant 0 : index
    %c0_14 = arith.constant 0 : index
    %13 = vector.load %arg7[%c0_13, %c0_14] : memref<1x128xf32, #tpu.memory_space<vmem>>, vector<1x128xf32>
    %14 = vector.broadcast %13 : vector<1x128xf32> to vector<16x128xf32>
    %15 = arith.addf %12, %14 : vector<16x128xf32>
    %c0_15 = arith.constant 0 : index
    %c0_16 = arith.constant 0 : index
    %16 = vector.load %arg8[%c0_15, %c0_16] : memref<16x128xf32, #tpu.memory_space<vmem>>, vector<16x128xf32>
    tpu.vector_store %arg8[%c0_15, %c0_16], %15 {strides = array<i32>} : memref<16x128xf32, #tpu.memory_space<vmem>>, vector<16x128xf32>,
    return
  }
  func.func @transform_0(%arg0: i32) -> (i32, i32) {
    %c0_i32 = arith.constant 0 : i32
    %c0_i32_0 = arith.constant 0 : i32
    return %arg0, %c0_i32 : i32, i32
  }
  func.func @transform_1(%arg0: i32) -> (i32, i32) {
    %c0_i32 = arith.constant 0 : i32
    %c0_i32_0 = arith.constant 0 : i32
    %c0_i32_1 = arith.constant 0 : i32
    return %c0_i32, %c0_i32_0 : i32, i32
  }
  func.func @transform_2(%arg0: i32) -> (i32, i32) {
    %c0_i32 = arith.constant 0 : i32
    %c0_i32_0 = arith.constant 0 : i32
    %c0_i32_1 = arith.constant 0 : i32
    return %c0_i32, %c0_i32_0 : i32, i32
  }
  func.func @transform_3(%arg0: i32) -> (i32, i32) {
    %c0_i32 = arith.constant 0 : i32
    %c0_i32_0 = arith.constant 0 : i32
    %c0_i32_1 = arith.constant 0 : i32
    return %c0_i32, %c0_i32_0 : i32, i32
  }
  func.func @transform_4(%arg0: i32) -> (i32, i32) {
    %c0_i32 = arith.constant 0 : i32
    %c0_i32_0 = arith.constant 0 : i32
    %c0_i32_1 = arith.constant 0 : i32
    return %c0_i32, %c0_i32_0 : i32, i32
  }
  func.func @transform_5(%arg0: i32) -> (i32, i32) {
    %c0_i32 = arith.constant 0 : i32
    %c0_i32_0 = arith.constant 0 : i32
    %c0_i32_1 = arith.constant 0 : i32
    return %c0_i32, %c0_i32_0 : i32, i32
  }
  func.func @transform_6(%arg0: i32) -> (i32, i32) {
    %c0_i32 = arith.constant 0 : i32
    %c0_i32_0 = arith.constant 0 : i32
    %c0_i32_1 = arith.constant 0 : i32
    return %c0_i32, %c0_i32_0 : i32, i32
  }
  func.func @transform_7(%arg0: i32) -> (i32, i32) {
    %c0_i32 = arith.constant 0 : i32
    %c0_i32_0 = arith.constant 0 : i32
    return %arg0, %c0_i32 : i32, i32
  }
}

</mosaic_0001>

<bundles_post_ra>
// kernel: tpu_custom_call.1
= control target key start
LH: loop header
LB: loop body
LE: loop exit
PB: predicated region body
PF: predicated region fallthrough
CT: control target
= control target key end

     0   :  { %12 = vsyncpa [#allocation3], 0  ;;  %s1280_s0 = inlined_call_operand.hbm [shape: f32[16,32], index: 0, kind: input, shape index: {}]   ;;  %s1281_s1 = inlined_call_operand.hbm [shape: f32[32,64], index: 1, kind: input, shape index: {}]   ;;  %s1282_s2 = inlined_call_operand.vmem [shape: f32[1,64], index: 2, kind: input, shape index: {}]   ;;  %s1283_s3 = inlined_call_operand.hbm [shape: f32[64,64], index: 3, kind: input, shape index: {}]   ;;  %s1284_s4 = inlined_call_operand.vmem [shape: f32[1,64], index: 4, kind: input, shape index: {}]   ;;  %s1285_s5 = inlined_call_operand.hbm [shape: f32[64,128], index: 5, kind: input, shape index: {}]   ;;  %s1286_s6 = inlined_call_operand.vmem [shape: f32[1,128], index: 6, kind: input, shape index: {}]   ;;  %s1287_s7 = inlined_call_operand.hbm [shape: f32[16,128], index: 7, kind: output, shape index: {}]  }
   0x1   :  { %13 = vsyncpa [#allocation6], 0 }
   0x2   :  { %14 = vsyncpa [#allocation9], 0 }
   0x3   :  { %15 = vsyncpa [#allocation4], 0  ;;  %s33_s26 = sshll.u32 %s1281_s1, 4  ;;  %s1065_s27 = smov [#allocation5]   ;;  %s34_s26 = int_to_ptr.hbm [resolvable:$true] %s33_s26 }
   0x4   :  { %s35_s28 = sshll.u32 %s1065_s27, 4  ;;  %s20_s8 = sshll.u32 %s1280_s0, 4  ;;  %s36_s28 = int_to_ptr.vmem [resolvable:$true] %s35_s28  ;;  %s21_s8 = int_to_ptr.hbm [resolvable:$true] %s20_s8 }
   0x5   :  { %s1066_s9 = smov 128   ;;  %s1067_s10 = smov 8  }
   0x6   :  { %41 = dma.hbm_to_vmem [thread:$0]  %s34_s26, 512, %s36_s28, [#allocation6], %s1066_s9, %s1066_s9, %s1067_s10  }
   0x7   :  { %s1068_s11 = smov [#allocation2]   ;;  %s48_s1 = sshll.u32 %s1283_s3, 4  ;;  %s49_s1 = int_to_ptr.hbm [resolvable:$true] %s48_s1 }
   0x8   :  { %s22_s12 = sshll.u32 %s1068_s11, 4  ;;  %s63_s16 = sshll.u32 %s1285_s5, 4  ;;  %s23_s12 = int_to_ptr.vmem [resolvable:$true] %s22_s12  ;;  %s64_s16 = int_to_ptr.hbm [resolvable:$true] %s63_s16 }
   0x9   :  { %28 = dma.hbm_to_vmem [thread:$0]  %s21_s8, 256, %s23_s12, [#allocation3], %s1066_s9, %s1066_s9, %s1067_s10  }
   0xa   :  { %s1069_s17 = smov [#allocation7]   ;;  %s1070_s19 = smov [#allocation8]  }
   0xb   :  { %s50_s18 = sshll.u32 %s1069_s17, 4  ;;  %s65_s3 = sshll.u32 %s1070_s19, 4  ;;  %s51_s18 = int_to_ptr.vmem [resolvable:$true] %s50_s18  ;;  %s66_s3 = int_to_ptr.vmem [resolvable:$true] %s65_s3 }
   0xc   :  { %56 = dma.hbm_to_vmem [thread:$0]  %s49_s1, 1024, %s51_s18, [#allocation6], %s1066_s9, %s1066_s9, %s1067_s10  }
   0xd   :  { %71 = dma.hbm_to_vmem [thread:$0]  %s64_s16, 1024, %s66_s3, [#allocation9], %s1066_s9, %s1066_s9, %s1067_s10  }
   0xe   :  { %1057 = dma.done.wait [#allocation3], 256  }
   0xf   :  { %1058 = vsyncadd [#allocation3], 4294967040 }
  0x10   :  { %1059 = dma.done.wait [#allocation6], 1536  }
  0x11   :  { %1060 = vsyncadd [#allocation6], 4294965760 }
  0x12   :  { %1061 = dma.done.wait [#allocation9], 1024  }
  0x13   :  { %1062 = vsyncadd [#allocation9], 4294966272  ;;  %vm100_vm0 = vcmask 261120   ;;  %v95_v0 = vld [vmem:[#allocation5 + $0x18] sm:$0xff]  ;;  %v94_v1 = vld [vmem:[#allocation5 + $0x10] sm:$0xff]  ;;  %vm335_vm1 = vcmask 523264  }
  0x14   :  { %v93_v2 = vld [vmem:[#allocation5 + $0x8] sm:$0xff]  ;;  %v119_v3 = vand.u32 4294901760, %v95_v0  ;;  %v1136_v4 = vand.u32 4294901760, %v94_v1  ;;  %v92_v6 = vld [vmem:[#allocation5] sm:$0xff]  ;;  %v91_v7 = vld [vmem:[#allocation2 + $0x8] sm:$0xff]  ;;  %s904_s26 = sshll.u32 %s1287_s7, 4  ;;  %s905_s26 = int_to_ptr.hbm [resolvable:$true] %s904_s26 }
  0x15   :  { %v1138_v5 = vand.u32 4294901760, %v93_v2  ;;  %v90_v8 = vld [vmem:[#allocation2] sm:$0xff]  ;;  %v1140_v9 = vand.u32 4294901760, %v92_v6  ;;  %v105_v10 = vsel %vm100_vm0, %v91_v7, 0  ;;  %v330_v38 = vld [vmem:[#allocation7 + $0x38] sm:$0xff]  ;;  %v328_v43 = vld [vmem:[#allocation7 + $0x28] sm:$0xff] }
  0x16   :  { %v102_v11 = vsel %vm100_vm0, %v90_v8, 0  ;;  %919 = vmatpush.msra.mxu2 %v119_v3  ;;  %v157_v12 = vsub.f32 %v95_v0, %v119_v3  ;;  %v1142_v13 = vand.u32 4294901760, %v105_v10  ;;  %v163_v14 = vsub.f32 %v94_v1, %v1136_v4  ;;  %120 = vmatpush.msra.mxu0 %v119_v3  ;;  %v329_v40 = vld [vmem:[#allocation7 + $0x30] sm:$0xff]  ;;  %v327_v47 = vld [vmem:[#allocation7 + $0x20] sm:$0xff]  ;;  %v326_v52 = vld [vmem:[#allocation7 + $0x18] sm:$0xff] }
  0x17   :  { %v169_v15 = vsub.f32 %v93_v2, %v1138_v5  ;;  %v175_v16 = vsub.f32 %v92_v6, %v1140_v9  ;;  %v127_v17 = vand.u32 4294901760, %v102_v11  ;;  %v1163_v39 = vand.u32 4294901760, %v330_v38  ;;  %v325_v58 = vld [vmem:[#allocation7 + $0x10] sm:$0xff]  ;;  %v324_v0 = vld [vmem:[#allocation7 + $0x8] sm:$0xff]  ;;  %v323_v6 = vld [vmem:[#allocation7] sm:$0xff] }
  0x18   :  { %920 = vmatpush.msra.mxu2 %v1136_v4  ;;  %v158_v18 = vand.u32 4294901760, %v157_v12  ;;  %v136_v19 = vsub.f32 %v105_v10, %v1142_v13  ;;  %v164_v20 = vand.u32 4294901760, %v163_v14  ;;  %122 = vmatpush.msra.mxu0 %v1136_v4  ;;  %v1168_v42 = vand.u32 4294901760, %v329_v40 }
  0x19   :  { %v170_v21 = vand.u32 4294901760, %v169_v15  ;;  %v176_v22 = vand.u32 4294901760, %v175_v16  ;;  %v128_v23 = vsub.f32 %v102_v11, %v127_v17  ;;  %v1166_v41 = vsub.f32 %v330_v38, %v1163_v39 }
  0x1a   :  { %921 = vmatpush.msra.mxu2 %v1138_v5  ;;  %v159_v24 = vsub.f32 %v157_v12, %v158_v18  ;;  %v137_v25 = vand.u32 4294901760, %v136_v19  ;;  %v165_v26 = vsub.f32 %v163_v14, %v164_v20  ;;  %124 = vmatpush.msra.mxu0 %v1138_v5  ;;  %v1174_v45 = vsub.f32 %v329_v40, %v1168_v42 }
  0x1b   :  { %v171_v27 = vsub.f32 %v169_v15, %v170_v21  ;;  %v129_v28 = vand.u32 4294901760, %v128_v23  ;;  %v177_v32 = vsub.f32 %v175_v16, %v176_v22  ;;  %v393_v44 = vand.u32 4294901760, %v1166_v41 }
  0x1c   :  { %922 = vmatpush.msra.mxu2 %v1140_v9  ;;  %v160_v29 = vand.u32 4294901760, %v159_v24  ;;  %v138_v30 = vsub.f32 %v136_v19, %v137_v25  ;;  %v166_v31 = vand.u32 4294901760, %v165_v26  ;;  %126 = vmatpush.msra.mxu0 %v1140_v9  ;;  %v1177_v46 = vand.u32 4294901760, %v328_v43 }
  0x1d   :  { %v130_v33 = vsub.f32 %v128_v23, %v129_v28  ;;  %v172_v35 = vand.u32 4294901760, %v171_v27  ;;  %v178_v37 = vand.u32 4294901760, %v177_v32  ;;  %v394_v48 = vsub.f32 %v1166_v41, %v393_v44 }
  0x1e   :  { %203 = vmatpush.msrb.mxu2 %v157_v12  ;;  %272 = vmatpush.msrb.mxu0 %v158_v18  ;;  %v139_v34 = vand.u32 4294901760, %v138_v30  ;;  %v399_v49 = vand.u32 4294901760, %v1174_v45  ;;  %v1186_v50 = vsub.f32 %v328_v43, %v1177_v46  ;;  %v1189_v51 = vand.u32 4294901760, %v327_v47 }
  0x1f   :  { %923 = vmatpush.msra.mxu3 %v160_v29  ;;  %161 = vmatpush.msra.mxu1 %v160_v29  ;;  %v131_v36 = vand.u32 4294901760, %v130_v33  ;;  %v395_v53 = vand.u32 4294901760, %v394_v48  ;;  %v1198_v57 = vand.u32 4294901760, %v326_v52  ;;  %v360_v62 = vand.u32 4294901760, %v325_v58 }
  0x20   :  { %206 = vmatpush.msrb.mxu2 %v163_v14  ;;  %276 = vmatpush.msrb.mxu0 %v164_v20  ;;  %v400_v54 = vsub.f32 %v1174_v45, %v399_v49  ;;  %v405_v55 = vand.u32 4294901760, %v1186_v50  ;;  %v410_v56 = vsub.f32 %v327_v47, %v1189_v51  ;;  %v364_v10 = vand.u32 4294901760, %v323_v6 }
  0x21   :  { %140 = vmatmul.f32.vlgmr.msra.gmra.mxu2 %v139_v34  ;;  %924 = vmatpush.msra.mxu3 %v166_v31  ;;  %v416_v63 = vsub.f32 %v326_v52, %v1198_v57 }
  0x22   :  { %209 = vmatpush.msrb.mxu2 %v169_v15  ;;  %167 = vmatpush.msra.mxu1 %v166_v31  ;;  %v401_v59 = vand.u32 4294901760, %v400_v54  ;;  %v406_v60 = vsub.f32 %v1186_v50, %v405_v55  ;;  %v411_v61 = vand.u32 4294901760, %v410_v56  ;;  %v434_v14 = vsub.f32 %v323_v6, %v364_v10 }
  0x23   :  { %925 = vmatpush.msra.mxu3 %v172_v35  ;;  %132 = vmatmul.f32.vlgmr.msra.gmra.mxu0 %v131_v36 }
  0x24   :  { %212 = vmatpush.msrb.mxu2 %v175_v16  ;;  %173 = vmatpush.msra.mxu1 %v172_v35  ;;  %v407_v1 = vand.u32 4294901760, %v406_v60  ;;  %v412_v2 = vsub.f32 %v410_v56, %v411_v61  ;;  %v435_v18 = vand.u32 4294901760, %v434_v14 }
  0x25   :  { %926 = vmatpush.msra.mxu3 %v178_v37  ;;  %280 = vmatpush.msrb.mxu0 %v170_v21 }
  0x26   :  { %185 = vmatmul.f32.vlgmr.msra.gmra.mxu3 %v1142_v13  ;;  %179 = vmatpush.msra.mxu1 %v178_v37  ;;  %v413_v7 = vand.u32 4294901760, %v412_v2  ;;  %v436_v20 = vsub.f32 %v434_v14, %v435_v18 }
  0x27   :  { %237 = vmatpush.msrb.mxu3 %v119_v3  ;;  %181 = vmatmul.f32.vlgmr.msra.gmra.mxu1 %v127_v17 }
  0x28   :  { %307 = vmatpush.msrb.mxu1 %v119_v3  ;;  %284 = vmatpush.msrb.mxu0 %v176_v22  ;;  %v422_v3 = vsub.f32 %v325_v58, %v360_v62  ;;  %v437_v21 = vand.u32 4294901760, %v436_v20 }
  0x29   :  { %215 = vmatmul.f32.vlgmr.msrb.gmra.mxu2 %v128_v23  ;;  %239 = vmatpush.msrb.mxu3 %v1136_v4  ;;  %v934_v23 = vld [vmem:[%s1282_s2] ss:$0 sm:$0xff] }
  0x2a   :  { %309 = vmatpush.msrb.mxu1 %v1136_v4  ;;  %351 = vmatpush.msra.mxu2 %v1163_v39  ;;  %v362_v4 = vand.u32 4294901760, %v324_v0  ;;  %v423_v8 = vand.u32 4294901760, %v422_v3 }
  0x2b   :  { %241 = vmatpush.msrb.mxu3 %v1138_v5  ;;  %286 = vmatmul.f32.vlgmr.msrb.gmra.mxu0 %v127_v17 }
  0x2c   :  { %311 = vmatpush.msrb.mxu1 %v1138_v5  ;;  %458 = vmatpush.msra.mxu0 %v1166_v41  ;;  %v417_v5 = vand.u32 4294901760, %v416_v63  ;;  %v424_v12 = vsub.f32 %v422_v3, %v423_v8 }
  0x2d   :  { %243 = vmatpush.msrb.mxu3 %v1140_v9  ;;  %353 = vmatpush.msra.mxu2 %v1168_v42 }
  0x2e   :  { %247 = vmatmul.f32.vlgmr.msrb.gmra.mxu3 %v129_v28  ;;  %313 = vmatpush.msrb.mxu1 %v1140_v9  ;;  %v428_v9 = vsub.f32 %v324_v0, %v362_v4  ;;  %v418_v11 = vsub.f32 %v416_v63, %v417_v5  ;;  %v425_v16 = vand.u32 4294901760, %v424_v12  ;;  %v615_v0 = vld [vmem:[#allocation8 + $0x28] sm:$0xff] }
  0x2f   :  { %315 = vmatmul.f32.vlgmr.msrb.gmra.mxu1 %v127_v17  ;;  %461 = vmatpush.msra.mxu0 %v1174_v45 }
  0x30   :  { %500 = vmatpush.msra.mxu1 %v1163_v39  ;;  %355 = vmatpush.msra.mxu2 %v1177_v46  ;;  %v419_v15 = vand.u32 4294901760, %v418_v11 }
  0x31   :  { %220 = vmatmul.f32.gmra.mxu2 %v136_v19  ;;  %464 = vmatpush.msra.mxu0 %v1186_v50 }
  0x32   :  { %502 = vmatpush.msra.mxu1 %v1168_v42  ;;  %357 = vmatpush.msra.mxu2 %v1189_v51 }
  0x33   :  { %290 = vmatmul.f32.gmra.mxu0 %v1142_v13  ;;  %396 = vmatpush.msra.mxu3 %v395_v53 }
  0x34   :  { %504 = vmatpush.msra.mxu1 %v1177_v46  ;;  %467 = vmatpush.msra.mxu0 %v410_v56 }
  0x35   :  { %359 = vmatpush.msra.mxu2 %v1198_v57  ;;  %402 = vmatpush.msra.mxu3 %v401_v59  ;;  %v617_v59 = vld [vmem:[#allocation8 + $0x38] sm:$0xff] }
  0x36   :  { %253 = vmatmul.f32.gmra.mxu3 %v137_v25  ;;  %506 = vmatpush.msra.mxu1 %v1189_v51  ;;  %v1217_v60 = vand.u32 4294901760, %v617_v59 }
  0x37   :  { %319 = vmatmul.f32.gmra.mxu1 %v1142_v13  ;;  %470 = vmatpush.msra.mxu0 %v416_v63  ;;  %v429_v13 = vand.u32 4294901760, %v428_v9 }
  0x38   :  { %508 = vmatpush.msra.mxu1 %v1198_v57  ;;  %408 = vmatpush.msra.mxu3 %v407_v1 }
  0x39   :  { %361 = vmatpush.msra.mxu2 %v360_v62  ;;  %473 = vmatpush.msra.mxu0 %v422_v3  ;;  %v430_v17 = vsub.f32 %v428_v9, %v429_v13  ;;  %v1231_v3 = vand.u32 4294901760, %v615_v0 }
  0x3a   :  { %510 = vmatpush.msra.mxu1 %v360_v62  ;;  %414 = vmatpush.msra.mxu3 %v413_v7 }
  0x3b   :  { %363 = vmatpush.msra.mxu2 %v362_v4  ;;  %476 = vmatpush.msra.mxu0 %v428_v9  ;;  %v431_v19 = vand.u32 4294901760, %v430_v17  ;;  %v1240_v7 = vsub.f32 %v615_v0, %v1231_v3  ;;  %v613_v9 = vld [vmem:[#allocation8 + $0x18] sm:$0xff] }
  0x3c   :  { %512 = vmatpush.msra.mxu1 %v362_v4  ;;  %420 = vmatpush.msra.mxu3 %v419_v15  ;;  %v612_v15 = vld [vmem:[#allocation8 + $0x10] sm:$0xff] }
  0x3d   :  { %365 = vmatpush.msra.mxu2 %v364_v10  ;;  %479 = vmatpush.msra.mxu0 %v434_v14  ;;  %v691_v12 = vand.u32 4294901760, %v1240_v7  ;;  %v1252_v14 = vand.u32 4294901760, %v613_v9 }
  0x3e   :  { %514 = vmatpush.msra.mxu1 %v364_v10  ;;  %426 = vmatpush.msra.mxu3 %v425_v16 }
  0x3f   :  { %539 = vmatpush.msrb.mxu2 %v393_v44  ;;  %637 = vmatpush.msrb.mxu0 %v1217_v60  ;;  %v692_v17 = vsub.f32 %v1240_v7, %v691_v12  ;;  %v702_v20 = vsub.f32 %v613_v9, %v1252_v14 }
  0x40   :  { %432 = vmatpush.msra.mxu3 %v431_v19  ;;  %v646_v19 = vand.u32 4294901760, %v612_v15 }
  0x41   :  { %543 = vmatpush.msrb.mxu2 %v399_v49 }
  0x42   :  { %438 = vmatpush.msra.mxu3 %v437_v21  ;;  %v611_v21 = vld [vmem:[#allocation8 + $0x8] sm:$0xff] }
  0x43   :  { %547 = vmatpush.msrb.mxu2 %v405_v55 }
  0x44   :  { %586 = vmatpush.msrb.mxu3 %v1163_v39 }
  0x45   :  { %551 = vmatpush.msrb.mxu2 %v411_v61  ;;  %v616_v61 = vld [vmem:[#allocation8 + $0x30] sm:$0xff] }
  0x46   :  { %588 = vmatpush.msrb.mxu3 %v1168_v42  ;;  %v1222_v63 = vand.u32 4294901760, %v616_v61 }
  0x47   :  { %555 = vmatpush.msrb.mxu2 %v417_v5 }
  0x48   :  { %590 = vmatpush.msrb.mxu3 %v1177_v46  ;;  %v1228_v2 = vsub.f32 %v616_v61, %v1222_v63  ;;  %639 = vmatpush.msrb.mxu0 %v1222_v63 }
  0x49   :  { %559 = vmatpush.msrb.mxu2 %v423_v8 }
  0x4a   :  { %592 = vmatpush.msrb.mxu3 %v1189_v51  ;;  %v685_v6 = vand.u32 4294901760, %v1228_v2  ;;  %641 = vmatpush.msrb.mxu0 %v1231_v3 }
  0x4b   :  { %563 = vmatpush.msrb.mxu2 %v429_v13 }
  0x4c   :  { %594 = vmatpush.msrb.mxu3 %v1198_v57  ;;  %v686_v11 = vsub.f32 %v1228_v2, %v685_v6 }
  0x4d   :  { %567 = vmatpush.msrb.mxu2 %v435_v18 }
  0x4e   :  { %596 = vmatpush.msrb.mxu3 %v360_v62  ;;  %v1220_v62 = vsub.f32 %v617_v59, %v1217_v60  ;;  %v687_v16 = vand.u32 4294901760, %v686_v11 }
  0x50   :  { %598 = vmatpush.msrb.mxu3 %v362_v4  ;;  %v679_v1 = vand.u32 4294901760, %v1220_v62  ;;  %v614_v4 = vld [vmem:[#allocation8 + $0x20] sm:$0xff] }
  0x51   :  { %v1243_v8 = vand.u32 4294901760, %v614_v4 }
  0x52   :  { %600 = vmatpush.msrb.mxu3 %v364_v10  ;;  %v680_v5 = vsub.f32 %v1220_v62, %v679_v1 }
  0x53   :  { %v696_v13 = vsub.f32 %v614_v4, %v1243_v8  ;;  %643 = vmatpush.msrb.mxu0 %v1243_v8 }
  0x54   :  { %v681_v10 = vand.u32 4294901760, %v680_v5 }
  0x55   :  { %v697_v18 = vand.u32 4294901760, %v696_v13  ;;  %645 = vmatpush.msrb.mxu0 %v1252_v14 }
  0x56   :  { %682 = vmatpush.msrb.mxu1 %v681_v10 }
  0x57   :  { %647 = vmatpush.msrb.mxu0 %v646_v19 }
  0x58   :  { %688 = vmatpush.msrb.mxu1 %v687_v16 }
  0xa0   :  { %v133_v22 = vpop.f32.mrf.mxu0 }
  0xa1   :  { %v134_v25 = vadd.f32 %v934_v23, %v133_v22  ;;  %v693_v22 = vand.u32 4294901760, %v692_v17  ;;  %v936_v17 = vld [vmem:[%s1286_s6] ss:$0 sm:$0xff]  ;;  %s1071_s6 = smov [#allocation10]  }
  0xa2   :  { %s902_s23 = sshll.u32 %s1071_s6, 4  ;;  %s903_s23 = int_to_ptr.vmem [resolvable:$true] %s902_s23 }
  0xa3   :  { %694 = vmatpush.msrb.mxu1 %v693_v22 }
  0xa4   :  { %v141_v24 = vpop.f32.mrf.mxu2  ;;  %v182_v26 = vpop.f32.mrf.mxu1 }
  0xa5   :  { %v183_v28 = vadd.f32 %v182_v26, %v134_v25  ;;  %v142_v34 = vadd.f32 %v934_v23, %v141_v24  ;;  %v698_v23 = vsub.f32 %v696_v13, %v697_v18  ;;  %v708_v24 = vsub.f32 %v612_v15, %v646_v19 }
  0xa6   :  { %v648_v25 = vand.u32 4294901760, %v611_v21  ;;  %v703_v26 = vand.u32 4294901760, %v702_v20 }
  0xa8   :  { %v287_v31 = vpop.f32.mrf.mxu0  ;;  %649 = vmatpush.msrb.mxu0 %v648_v25 }
  0xa9   :  { %v186_v27 = vpop.f32.mrf.mxu3 }
  0xaa   :  { %v187_v38 = vadd.f32 %v186_v27, %v142_v34  ;;  %v610_v27 = vld [vmem:[#allocation8] sm:$0xff] }
  0xac   :  { %v216_v29 = vpop.f32.mrf.mxu2  ;;  %v316_v33 = vpop.f32.mrf.mxu1 }
  0xad   :  { %v217_v30 = vadd.f32 %v216_v29, %v183_v28  ;;  %v699_v28 = vand.u32 4294901760, %v698_v23  ;;  %v709_v29 = vand.u32 4294901760, %v708_v24 }
  0xaf   :  { %700 = vmatpush.msrb.mxu1 %v699_v28 }
  0xb0   :  { %v291_v44 = vpop.f32.mrf.mxu0 }
  0xb1   :  { %v248_v32 = vpop.f32.mrf.mxu3 }
  0xb2   :  { %v249_v35 = vadd.f32 %v248_v32, %v217_v30  ;;  %v714_v30 = vsub.f32 %v611_v21, %v648_v25  ;;  %v704_v32 = vsub.f32 %v702_v20, %v703_v26 }
  0xb4   :  { %v288_v36 = vadd.f32 %v287_v31, %v249_v35  ;;  %v221_v37 = vpop.f32.mrf.mxu2  ;;  %v320_v47 = vpop.f32.mrf.mxu1  ;;  %v650_v31 = vand.u32 4294901760, %v610_v27  ;;  %v715_v34 = vand.u32 4294901760, %v714_v30 }
  0xb5   :  { %v222_v40 = vadd.f32 %v221_v37, %v187_v38 }
  0xb6   :  { %v317_v39 = vadd.f32 %v316_v33, %v288_v36  ;;  %v710_v33 = vsub.f32 %v708_v24, %v709_v29  ;;  %v720_v35 = vsub.f32 %v610_v27, %v650_v31  ;;  %v705_v36 = vand.u32 4294901760, %v704_v32  ;;  %651 = vmatpush.msrb.mxu0 %v650_v31 }
  0xb7   :  { %v716_v38 = vsub.f32 %v714_v30, %v715_v34 }
  0xb8   :  { %v337_v41 = vsel %vm335_vm1, %v317_v39, 0  ;;  %v711_v37 = vand.u32 4294901760, %v710_v33  ;;  %v721_v39 = vand.u32 4294901760, %v720_v35  ;;  %706 = vmatpush.msrb.mxu1 %v705_v36 }
  0xb9   :  { %v366_v42 = vand.u32 4294901760, %v337_v41  ;;  %v254_v43 = vpop.f32.mrf.mxu3 }
  0xba   :  { %v255_v45 = vadd.f32 %v254_v43, %v222_v40  ;;  %v717_v40 = vand.u32 4294901760, %v716_v38  ;;  %712 = vmatpush.msrb.mxu1 %v711_v37 }
  0xbb   :  { %v367_v46 = vsub.f32 %v337_v41, %v366_v42  ;;  %440 = vmatmul.f32.vlgmr.msra.gmra.mxu3 %v366_v42  ;;  %v722_v41 = vsub.f32 %v720_v35, %v721_v39 }
  0xbc   :  { %v292_v48 = vadd.f32 %v291_v44, %v255_v45  ;;  %786 = vmatpush.msra.mxu3 %v1217_v60  ;;  %718 = vmatpush.msrb.mxu1 %v717_v40  ;;  %v935_v44 = vld [vmem:[%s1284_s4] ss:$0 sm:$0xff] }
  0xbd   :  { %482 = vmatmul.f32.vlgmr.msra.gmra.mxu0 %v367_v46  ;;  %v368_v49 = vand.u32 4294901760, %v367_v46 }
  0xbe   :  { %v321_v50 = vadd.f32 %v320_v47, %v292_v48  ;;  %788 = vmatpush.msra.mxu3 %v1222_v63  ;;  %825 = vmatpush.msra.mxu0 %v679_v1 }
  0xbf   :  { %518 = vmatmul.f32.vlgmr.msra.gmra.mxu1 %v368_v49  ;;  %v369_v51 = vsub.f32 %v367_v46, %v368_v49 }
  0xc0   :  { %v340_v52 = vsel %vm335_vm1, %v321_v50, 0  ;;  %790 = vmatpush.msra.mxu3 %v1231_v3  ;;  %829 = vmatpush.msra.mxu0 %v685_v6 }
  0xc1   :  { %v374_v53 = vand.u32 4294901760, %v340_v52  ;;  %v370_v54 = vand.u32 4294901760, %v369_v51 }
  0xc2   :  { %792 = vmatpush.msra.mxu3 %v1243_v8  ;;  %833 = vmatpush.msra.mxu0 %v691_v12 }
  0xc3   :  { %v375_v55 = vsub.f32 %v340_v52, %v374_v53  ;;  %371 = vmatmul.f32.vlgmr.msra.gmra.mxu2 %v370_v54  ;;  %444 = vmatmul.f32.gmra.mxu3 %v374_v53 }
  0xc4   :  { %744 = vmatpush.msra.mxu2 %v1220_v62  ;;  %794 = vmatpush.msra.mxu3 %v1252_v14 }
  0xc5   :  { %487 = vmatmul.f32.gmra.mxu0 %v375_v55  ;;  %v376_v56 = vand.u32 4294901760, %v375_v55 }
  0xc6   :  { %747 = vmatpush.msra.mxu2 %v1228_v2  ;;  %796 = vmatpush.msra.mxu3 %v646_v19 }
  0xc7   :  { %524 = vmatmul.f32.gmra.mxu1 %v376_v56  ;;  %v377_v57 = vsub.f32 %v375_v55, %v376_v56  ;;  %837 = vmatpush.msra.mxu0 %v697_v18 }
  0xc8   :  { %750 = vmatpush.msra.mxu2 %v1240_v7  ;;  %798 = vmatpush.msra.mxu3 %v648_v25 }
  0xc9   :  { %v378_v58 = vand.u32 4294901760, %v377_v57  ;;  %841 = vmatpush.msra.mxu0 %v703_v26 }
  0xca   :  { %753 = vmatpush.msra.mxu2 %v696_v13  ;;  %800 = vmatpush.msra.mxu3 %v650_v31 }
  0xcb   :  { %379 = vmatmul.f32.gmra.mxu2 %v378_v58  ;;  %602 = vmatmul.f32.vlgmr.msrb.gmra.mxu3 %v366_v42 }
  0xcc   :  { %756 = vmatpush.msra.mxu2 %v702_v20  ;;  %845 = vmatpush.msra.mxu0 %v709_v29 }
  0xce   :  { %759 = vmatpush.msra.mxu2 %v708_v24  ;;  %849 = vmatpush.msra.mxu0 %v715_v34 }
  0xd0   :  { %762 = vmatpush.msra.mxu2 %v714_v30  ;;  %853 = vmatpush.msra.mxu0 %v721_v39 }
  0xd2   :  { %765 = vmatpush.msra.mxu2 %v720_v35 }
  0xd3   :  { %569 = vmatmul.f32.vlgmr.msrb.gmra.mxu2 %v366_v42  ;;  %606 = vmatmul.f32.gmra.mxu3 %v374_v53  ;;  %v723_v42 = vand.u32 4294901760, %v722_v41 }
  0xd5   :  { %724 = vmatpush.msrb.mxu1 %v723_v42 }
  0xd7   :  { %872 = vmatpush.msra.mxu1 %v1217_v60 }
  0xd9   :  { %874 = vmatpush.msra.mxu1 %v1222_v63 }
  0xdb   :  { %573 = vmatmul.f32.gmra.mxu2 %v374_v53  ;;  %876 = vmatpush.msra.mxu1 %v1231_v3 }
  0xdd   :  { %878 = vmatpush.msra.mxu1 %v1243_v8 }
  0xdf   :  { %880 = vmatpush.msra.mxu1 %v1252_v14 }
  0xe1   :  { %882 = vmatpush.msra.mxu1 %v646_v19 }
  0xe3   :  { %884 = vmatpush.msra.mxu1 %v648_v25 }
  0xe5   :  { %886 = vmatpush.msra.mxu1 %v650_v31 }
 0x13a   :  { %v483_v49 = vpop.f32.mrf.mxu0 }
 0x13c   :  { %v519_v53 = vpop.f32.mrf.mxu1 }
 0x13e   :  { %v441_v43 = vpop.f32.mrf.mxu3 }
 0x142   :  { %v488_v59 = vpop.f32.mrf.mxu0 }
 0x144   :  { %v525_v63 = vpop.f32.mrf.mxu1 }
 0x146   :  { %v372_v45 = vpop.f32.mrf.mxu2  ;;  %v445_v47 = vpop.f32.mrf.mxu3 }
 0x147   :  { %v373_v46 = vadd.f32 %v935_v44, %v372_v45 }
 0x149   :  { %v442_v48 = vadd.f32 %v441_v43, %v373_v46 }
 0x14b   :  { %v484_v52 = vadd.f32 %v483_v49, %v442_v48 }
 0x14d   :  { %v520_v55 = vadd.f32 %v519_v53, %v484_v52 }
 0x14e   :  { %v380_v50 = vpop.f32.mrf.mxu2  ;;  %v603_v56 = vpop.f32.mrf.mxu3 }
 0x14f   :  { %v381_v51 = vadd.f32 %v935_v44, %v380_v50 }
 0x151   :  { %v446_v54 = vadd.f32 %v445_v47, %v381_v51 }
 0x153   :  { %v489_v61 = vadd.f32 %v488_v59, %v446_v54 }
 0x155   :  { %v526_v1 = vadd.f32 %v525_v63, %v489_v61 }
 0x156   :  { %v570_v57 = vpop.f32.mrf.mxu2  ;;  %v607_v5 = vpop.f32.mrf.mxu3 }
 0x157   :  { %v571_v58 = vadd.f32 %v570_v57, %v520_v55 }
 0x159   :  { %v604_v60 = vadd.f32 %v603_v56, %v571_v58 }
 0x15b   :  { %v623_v62 = vsel %vm335_vm1, %v604_v60, 0 }
 0x15c   :  { %v652_v0 = vand.u32 4294901760, %v623_v62 }
 0x15e   :  { %v653_v2 = vsub.f32 %v623_v62, %v652_v0  ;;  %v574_v3 = vpop.f32.mrf.mxu2  ;;  %726 = vmatmul.f32.vlgmr.msrb.gmra.mxu1 %v652_v0 }
 0x15f   :  { %v575_v4 = vadd.f32 %v574_v3, %v526_v1 }
 0x160   :  { %768 = vmatmul.f32.vlgmr.msra.gmra.mxu2 %v653_v2  ;;  %v654_v6 = vand.u32 4294901760, %v653_v2 }
 0x161   :  { %v608_v7 = vadd.f32 %v607_v5, %v575_v4 }
 0x162   :  { %804 = vmatmul.f32.vlgmr.msra.gmra.mxu3 %v654_v6  ;;  %v655_v8 = vsub.f32 %v653_v2, %v654_v6 }
 0x163   :  { %v626_v9 = vsel %vm335_vm1, %v608_v7, 0 }
 0x164   :  { %v660_v10 = vand.u32 4294901760, %v626_v9  ;;  %v656_v11 = vand.u32 4294901760, %v655_v8 }
 0x166   :  { %657 = vmatmul.f32.vlgmr.msrb.gmra.mxu0 %v656_v11  ;;  %730 = vmatmul.f32.gmra.mxu1 %v660_v10  ;;  %v661_v12 = vsub.f32 %v626_v9, %v660_v10 }
 0x168   :  { %773 = vmatmul.f32.gmra.mxu2 %v661_v12  ;;  %v662_v13 = vand.u32 4294901760, %v661_v12 }
 0x16a   :  { %810 = vmatmul.f32.gmra.mxu3 %v662_v13  ;;  %v663_v14 = vsub.f32 %v661_v12, %v662_v13 }
 0x16c   :  { %v664_v15 = vand.u32 4294901760, %v663_v14 }
 0x16e   :  { %665 = vmatmul.f32.gmra.mxu0 %v664_v15  ;;  %888 = vmatmul.f32.vlgmr.msra.gmra.mxu1 %v652_v0 }
 0x176   :  { %855 = vmatmul.f32.vlgmr.msra.gmra.mxu0 %v652_v0  ;;  %892 = vmatmul.f32.gmra.mxu1 %v660_v10 }
 0x17e   :  { %859 = vmatmul.f32.gmra.mxu0 %v660_v10 }
 0x1db   :  { %v727_v16 = vpop.f32.mrf.mxu1 }
 0x1e3   :  { %v658_v18 = vpop.f32.mrf.mxu0  ;;  %v731_v20 = vpop.f32.mrf.mxu1 }
 0x1e4   :  { %v659_v19 = vadd.f32 %v936_v17, %v658_v18  ;;  %v769_v22 = vpop.f32.mrf.mxu2 }
 0x1e5   :  { %v805_v26 = vpop.f32.mrf.mxu3 }
 0x1e6   :  { %v728_v21 = vadd.f32 %v727_v16, %v659_v19 }
 0x1e8   :  { %v770_v24 = vadd.f32 %v769_v22, %v728_v21 }
 0x1ea   :  { %v806_v27 = vadd.f32 %v805_v26, %v770_v24 }
 0x1eb   :  { %v666_v23 = vpop.f32.mrf.mxu0  ;;  %v889_v29 = vpop.f32.mrf.mxu1 }
 0x1ec   :  { %v667_v25 = vadd.f32 %v936_v17, %v666_v23  ;;  %v774_v32 = vpop.f32.mrf.mxu2 }
 0x1ed   :  { %v811_v35 = vpop.f32.mrf.mxu3 }
 0x1ee   :  { %v732_v28 = vadd.f32 %v731_v20, %v667_v25 }
 0x1f0   :  { %v775_v33 = vadd.f32 %v774_v32, %v732_v28 }
 0x1f2   :  { %v812_v36 = vadd.f32 %v811_v35, %v775_v33 }
 0x1f3   :  { %v856_v30 = vpop.f32.mrf.mxu0  ;;  %v893_v39 = vpop.f32.mrf.mxu1 }
 0x1f4   :  { %v857_v31 = vadd.f32 %v856_v30, %v806_v27 }
 0x1f6   :  { %v890_v34 = vadd.f32 %v889_v29, %v857_v31 }
 0x1f8   :  { %896 = vst [vmem:[#allocation10] sm:$0xff] %v890_v34 }
 0x1fb   :  { %v860_v37 = vpop.f32.mrf.mxu0 }
 0x1fc   :  { %v861_v38 = vadd.f32 %v860_v37, %v812_v36 }
 0x1fe   :  { %v894_v40 = vadd.f32 %v893_v39, %v861_v38 }
 0x200   :  { %897 = vst [vmem:[#allocation10 + $0x8] sm:$0xff] %v894_v40 }
 0x201   :  { %910 = dma.vmem_to_hbm [thread:$0]  %s903_s23, 256, %s905_s26, [#allocation4], %s1066_s9, %s1066_s9, %s1067_s10  }
 0x202   :  { %1063 = dma.done.wait [#allocation4], 256  }
 0x203   :  { %1064 = vsyncadd [#allocation4], 4294967040 }
 0x204   :  { %915 = vsyncpa [#allocation3], 1 }
 0x205   :  { %916 = vsyncpa [#allocation6], 1 }
 0x206   :  { %917 = vsyncpa [#allocation9], 1 }
 0x207   :  { %918 = vsyncpa [#allocation4], 1 }

</bundles_post_ra>
